<compile_context>
chip_gen: v7x
topology: tpu7x:2x2x1
jax: 0.10.0
libtpu: 0.0.40
codegen_flags: <defaults>
</compile_context>

<pallas_src>
import jax
import jax.numpy as jnp
from jax.experimental import pallas as pl
from jax.experimental.pallas import tpu as pltpu

HIDDEN = 128


def _round_up(n, m):
    return (n + m - 1) // m * m


def _cdiv(a, b):
    return (a + b - 1) // b


def _mlp_kernel(x_ref, w1_ref, b1_ref, w2_ref, b2_ref,
                w3_ref, b3_ref, w4_ref, b4_ref, o_ref):
    cd = w1_ref.dtype  # compute dtype for MXU inputs (bf16)
    # fc1 + relu (cast of x and bias add / relu run on the VPU, hidden under
    # the MXU slot / DMA)
    h = jnp.dot(x_ref[...].astype(cd), w1_ref[...],
                preferred_element_type=jnp.float32)
    h = jnp.maximum(h + b1_ref[...], 0.0)
    # dropout1: identity (eval mode)
    # fc2 + relu
    h = jnp.dot(h.astype(cd), w2_ref[...], preferred_element_type=jnp.float32)
    h = jnp.maximum(h + b2_ref[...], 0.0)
    # dropout2: identity (eval mode)
    # fc3 + relu
    h = jnp.dot(h.astype(cd), w3_ref[...], preferred_element_type=jnp.float32)
    h = jnp.maximum(h + b3_ref[...], 0.0)
    # dropout3: identity (eval mode)
    # fc4 (no activation); output block is the narrow (TB, out_n) f32 slab
    out = jnp.dot(h.astype(cd), w4_ref[...], preferred_element_type=jnp.float32)
    o_ref[...] = (out + b4_ref[...]).astype(o_ref.dtype)


def prepare_params(params, compute_dtype=jnp.bfloat16):
    """One-time preprocessing: weights -> bf16, biases -> f32 (1, out)."""
    prepped = {}
    for i in range(1, 5):
        prepped[f"w{i}"] = params[f"w{i}"].astype(compute_dtype)
        prepped[f"b{i}"] = params[f"b{i}"].astype(jnp.float32)
    return prepped


def _maybe_cast(a, dt):
    return a if a.dtype == jnp.dtype(dt) else a.astype(dt)


def pid_mlp_forward(x, params, *, block_b=2048, compute_dtype=jnp.bfloat16):
    """x: (B, in_features) f32. params: weights (in, out), biases (1, out)
    (ideally pre-cast via prepare_params)."""
    B, K = x.shape
    out_n = params["w4"].shape[1]
    cd = jnp.dtype(compute_dtype)

    # Balanced batch tiling: padding < 8 rows per step, and keep >= 4 grid
    # steps for large batches so v7x's two TensorCores both get work.
    n_steps = max(_cdiv(B, block_b), min(4, _cdiv(B, 8)))
    TB = _round_up(_cdiv(B, n_steps), 8)
    B_pad = _round_up(B, TB)
    grid = (B_pad // TB,)

    # Only pad the batch axis when needed (< 8 extra rows typically); x stays
    # f32 / unpadded in K -- the bf16 cast happens inside the kernel.
    xp = x if B_pad == B else jnp.zeros((B_pad, K), x.dtype).at[:B].set(x)

    # No-op casts when params were already prepared.
    w1 = _maybe_cast(params["w1"], cd)
    w2 = _maybe_cast(params["w2"], cd)
    w3 = _maybe_cast(params["w3"], cd)
    w4 = _maybe_cast(params["w4"], cd)
    b1 = _maybe_cast(params["b1"], jnp.float32)
    b2 = _maybe_cast(params["b2"], jnp.float32)
    b3 = _maybe_cast(params["b3"], jnp.float32)
    b4 = _maybe_cast(params["b4"], jnp.float32)

    # Tiled x / out; weights & biases resident across the whole grid.
    x_spec = pl.BlockSpec((TB, K), lambda i: (i, 0))
    out_spec = pl.BlockSpec((TB, out_n), lambda i: (i, 0))
    const = lambda i: (0, 0)

    def weight_specs(pipeline_mode):
        kw = {} if pipeline_mode is None else {"pipeline_mode": pipeline_mode}
        return [
            pl.BlockSpec((K, HIDDEN), const, **kw),
            pl.BlockSpec((1, HIDDEN), const, **kw),
            pl.BlockSpec((HIDDEN, HIDDEN), const, **kw),
            pl.BlockSpec((1, HIDDEN), const, **kw),
            pl.BlockSpec((HIDDEN, HIDDEN), const, **kw),
            pl.BlockSpec((1, HIDDEN), const, **kw),
            pl.BlockSpec((HIDDEN, out_n), const, **kw),
            pl.BlockSpec((1, out_n), const, **kw),
        ]

    flops = 2 * B_pad * HIDDEN * (K + 2 * HIDDEN + out_n)
    bytes_accessed = (
        B_pad * K * jnp.dtype(x.dtype).itemsize            # x in (f32, unpadded)
        + B_pad * out_n * 4                                 # out (f32, narrow)
        + (K * HIDDEN + 2 * HIDDEN * HIDDEN + HIDDEN * out_n) * cd.itemsize
        + (3 * HIDDEN + out_n) * 4                          # biases (f32)
    )
    cost = pl.CostEstimate(flops=flops, transcendentals=0,
                           bytes_accessed=bytes_accessed)

    def run(weight_pipeline_mode):
        return pl.pallas_call(
            _mlp_kernel,
            out_shape=jax.ShapeDtypeStruct((B_pad, out_n), jnp.float32),
            grid=grid,
            in_specs=[x_spec] + weight_specs(weight_pipeline_mode),
            out_specs=out_spec,
            compiler_params=pltpu.CompilerParams(
                dimension_semantics=("parallel",)),
            cost_estimate=cost,
        )(xp, w1, b1, w2, b2, w3, b3, w4, b4)

    try:
        # Revisited (constant-index) blocks need no double buffering.
        out_padded = run(pl.Buffered(buffer_count=1))
    except Exception:
        # Fallback if this JAX build rejects single-buffered pipeline mode.
        out_padded = run(None)

    return out_padded if B_pad == B else out_padded[:B]


def init_params(key, in_features, output_space_n):
    """Deterministic init matching the PyTorch module's layer shapes.
    PyTorch stores Linear weight as (out, in); we store the transpose (in, out)."""
    dims = [(in_features, HIDDEN), (HIDDEN, HIDDEN),
            (HIDDEN, HIDDEN), (HIDDEN, output_space_n)]
    params = {}
    for i, (fan_in, fan_out) in enumerate(dims, start=1):
        key, kw, kb = jax.random.split(key, 3)
        bound = 1.0 / jnp.sqrt(fan_in)
        params[f"w{i}"] = jax.random.uniform(
            kw, (fan_in, fan_out), jnp.float32, -bound, bound)
        params[f"b{i}"] = jax.random.uniform(
            kb, (1, fan_out), jnp.float32, -bound, bound)
    return params


def _reference(x, p, compute_dtype=jnp.bfloat16):
    """Same precision path as the kernel: bf16 matmul inputs, f32 accumulate."""
    cd = compute_dtype
    h = jnp.dot(x.astype(cd), p["w1"].astype(cd),
                preferred_element_type=jnp.float32) + p["b1"].astype(jnp.float32)
    h = jnp.maximum(h, 0.0)
    h = jnp.dot(h.astype(cd), p["w2"].astype(cd),
                preferred_element_type=jnp.float32) + p["b2"].astype(jnp.float32)
    h = jnp.maximum(h, 0.0)
    h = jnp.dot(h.astype(cd), p["w3"].astype(cd),
                preferred_element_type=jnp.float32) + p["b3"].astype(jnp.float32)
    h = jnp.maximum(h, 0.0)
    return jnp.dot(h.astype(cd), p["w4"].astype(cd),
                   preferred_element_type=jnp.float32) + p["b4"].astype(jnp.float32)


if __name__ == "__main__":
    batch = 4
    in_features = 32
    output_space_n = 10

    key = jax.random.PRNGKey(0)
    key, kx = jax.random.split(key)
    x = jax.random.normal(kx, (batch, in_features), jnp.float32)
    params = init_params(key, in_features, output_space_n)

    prepared = prepare_params(params)          # hoist casts out of the hot path
    out = pid_mlp_forward(x, prepared)
    jax.block_until_ready(out)

    ref = _reference(x, params)
    assert out.shape == (batch, output_space_n), out.shape
    assert jnp.allclose(out, ref, atol=2e-3, rtol=2e-3), "mismatch vs reference"

    print("KERNEL_OK")
</pallas_src>

<mosaic_0001>
module attributes {stable_mosaic.version = 11 : i64} {
  func.func @_mlp_kernel(%arg0: i32, %arg1: memref<8x32xf32, #tpu.memory_space<vmem>>, %arg2: memref<32x128xbf16, #tpu.memory_space<vmem>>, %arg3: memref<1x128xf32, #tpu.memory_space<vmem>>, %arg4: memref<128x128xbf16, #tpu.memory_space<vmem>>, %arg5: memref<1x128xf32, #tpu.memory_space<vmem>>, %arg6: memref<128x128xbf16, #tpu.memory_space<vmem>>, %arg7: memref<1x128xf32, #tpu.memory_space<vmem>>, %arg8: memref<128x10xbf16, #tpu.memory_space<vmem>>, %arg9: memref<1x10xf32, #tpu.memory_space<vmem>>, %arg10: memref<8x10xf32, #tpu.memory_space<vmem>>) attributes {dimension_semantics = [#tpu.dimension_semantics<parallel>], iteration_bounds = array<i64: 1>, scalar_prefetch = 0 : i64, scratch_operands = 0 : i64, tpu.core_type = #tpu.core_type<tc>, window_params = [{transform_indices = @transform_0, window_bounds = array<i64: 8, 32>}, {pipeline_mode = #tpu.pipeline_mode<synchronous>, transform_indices = @transform_1, window_bounds = array<i64: 32, 128>}, {pipeline_mode = #tpu.pipeline_mode<synchronous>, transform_indices = @transform_2, window_bounds = array<i64: 1, 128>}, {pipeline_mode = #tpu.pipeline_mode<synchronous>, transform_indices = @transform_3, window_bounds = array<i64: 128, 128>}, {pipeline_mode = #tpu.pipeline_mode<synchronous>, transform_indices = @transform_4, window_bounds = array<i64: 1, 128>}, {pipeline_mode = #tpu.pipeline_mode<synchronous>, transform_indices = @transform_5, window_bounds = array<i64: 128, 128>}, {pipeline_mode = #tpu.pipeline_mode<synchronous>, transform_indices = @transform_6, window_bounds = array<i64: 1, 128>}, {pipeline_mode = #tpu.pipeline_mode<synchronous>, transform_indices = @transform_7, window_bounds = array<i64: 128, 10>}, {pipeline_mode = #tpu.pipeline_mode<synchronous>, transform_indices = @transform_8, window_bounds = array<i64: 1, 10>}, {transform_indices = @transform_9, window_bounds = array<i64: 8, 10>}]} {
    %c0 = arith.constant 0 : index
    %c0_0 = arith.constant 0 : index
    %0 = vector.load %arg1[%c0, %c0_0] : memref<8x32xf32, #tpu.memory_space<vmem>>, vector<8x32xf32>
    %1 = arith.truncf %0 : vector<8x32xf32> to vector<8x32xbf16>
    %c0_1 = arith.constant 0 : index
    %c0_2 = arith.constant 0 : index
    %2 = vector.load %arg2[%c0_1, %c0_2] : memref<32x128xbf16, #tpu.memory_space<vmem>>, vector<32x128xbf16>
    %cst = arith.constant dense<0.000000e+00> : vector<8x128xf32>
    %3 = tpu.matmul %1, %2, %cst {dimension_numbers = #tpu.dot_dimension_numbers<[1], [0], [0], [1], [0, 0, 1, 1], [], []>} : vector<8x32xbf16>, vector<32x128xbf16>, vector<8x128xf32> -> vector<8x128xf32>
    %c0_3 = arith.constant 0 : index
    %c0_4 = arith.constant 0 : index
    %4 = vector.load %arg3[%c0_3, %c0_4] : memref<1x128xf32, #tpu.memory_space<vmem>>, vector<1x128xf32>
    %5 = vector.broadcast %4 : vector<1x128xf32> to vector<8x128xf32>
    %6 = arith.addf %3, %5 : vector<8x128xf32>
    %cst_5 = arith.constant 0.000000e+00 : f32
    %7 = vector.broadcast %cst_5 : f32 to vector<8x128xf32>
    %8 = arith.maximumf %6, %7 : vector<8x128xf32>
    %9 = arith.truncf %8 : vector<8x128xf32> to vector<8x128xbf16>
    %c0_6 = arith.constant 0 : index
    %c0_7 = arith.constant 0 : index
    %10 = vector.load %arg4[%c0_6, %c0_7] : memref<128x128xbf16, #tpu.memory_space<vmem>>, vector<128x128xbf16>
    %cst_8 = arith.constant dense<0.000000e+00> : vector<8x128xf32>
    %11 = tpu.matmul %9, %10, %cst_8 {dimension_numbers = #tpu.dot_dimension_numbers<[1], [0], [0], [1], [0, 0, 1, 1], [], []>} : vector<8x128xbf16>, vector<128x128xbf16>, vector<8x128xf32> -> vector<8x128xf32>
    %c0_9 = arith.constant 0 : index
    %c0_10 = arith.constant 0 : index
    %12 = vector.load %arg5[%c0_9, %c0_10] : memref<1x128xf32, #tpu.memory_space<vmem>>, vector<1x128xf32>
    %13 = vector.broadcast %12 : vector<1x128xf32> to vector<8x128xf32>
    %14 = arith.addf %11, %13 : vector<8x128xf32>
    %cst_11 = arith.constant 0.000000e+00 : f32
    %15 = vector.broadcast %cst_11 : f32 to vector<8x128xf32>
    %16 = arith.maximumf %14, %15 : vector<8x128xf32>
    %17 = arith.truncf %16 : vector<8x128xf32> to vector<8x128xbf16>
    %c0_12 = arith.constant 0 : index
    %c0_13 = arith.constant 0 : index
    %18 = vector.load %arg6[%c0_12, %c0_13] : memref<128x128xbf16, #tpu.memory_space<vmem>>, vector<128x128xbf16>
    %cst_14 = arith.constant dense<0.000000e+00> : vector<8x128xf32>
    %19 = tpu.matmul %17, %18, %cst_14 {dimension_numbers = #tpu.dot_dimension_numbers<[1], [0], [0], [1], [0, 0, 1, 1], [], []>} : vector<8x128xbf16>, vector<128x128xbf16>, vector<8x128xf32> -> vector<8x128xf32>
    %c0_15 = arith.constant 0 : index
    %c0_16 = arith.constant 0 : index
    %20 = vector.load %arg7[%c0_15, %c0_16] : memref<1x128xf32, #tpu.memory_space<vmem>>, vector<1x128xf32>
    %21 = vector.broadcast %20 : vector<1x128xf32> to vector<8x128xf32>
    %22 = arith.addf %19, %21 : vector<8x128xf32>
    %cst_17 = arith.constant 0.000000e+00 : f32
    %23 = vector.broadcast %cst_17 : f32 to vector<8x128xf32>
    %24 = arith.maximumf %22, %23 : vector<8x128xf32>
    %25 = arith.truncf %24 : vector<8x128xf32> to vector<8x128xbf16>
    %c0_18 = arith.constant 0 : index
    %c0_19 = arith.constant 0 : index
    %26 = vector.load %arg8[%c0_18, %c0_19] : memref<128x10xbf16, #tpu.memory_space<vmem>>, vector<128x10xbf16>
    %cst_20 = arith.constant dense<0.000000e+00> : vector<8x10xf32>
    %27 = tpu.matmul %25, %26, %cst_20 {dimension_numbers = #tpu.dot_dimension_numbers<[1], [0], [0], [1], [0, 0, 1, 1], [], []>} : vector<8x128xbf16>, vector<128x10xbf16>, vector<8x10xf32> -> vector<8x10xf32>
    %c0_21 = arith.constant 0 : index
    %c0_22 = arith.constant 0 : index
    %28 = vector.load %arg9[%c0_21, %c0_22] : memref<1x10xf32, #tpu.memory_space<vmem>>, vector<1x10xf32>
    %29 = vector.broadcast %28 : vector<1x10xf32> to vector<8x10xf32>
    %30 = arith.addf %27, %29 : vector<8x10xf32>
    %c0_23 = arith.constant 0 : index
    %c0_24 = arith.constant 0 : index
    %31 = vector.load %arg10[%c0_23, %c0_24] : memref<8x10xf32, #tpu.memory_space<vmem>>, vector<8x10xf32>
    tpu.vector_store %arg10[%c0_23, %c0_24], %30 {strides = array<i32>} : memref<8x10xf32, #tpu.memory_space<vmem>>, vector<8x10xf32>,
    return
  }
  func.func @transform_0(%arg0: i32) -> (i32, i32) {
    %c0_i32 = arith.constant 0 : i32
    %c0_i32_0 = arith.constant 0 : i32
    return %arg0, %c0_i32 : i32, i32
  }
  func.func @transform_1(%arg0: i32) -> (i32, i32) {
    %c0_i32 = arith.constant 0 : i32
    %c0_i32_0 = arith.constant 0 : i32
    %c0_i32_1 = arith.constant 0 : i32
    return %c0_i32, %c0_i32_0 : i32, i32
  }
  func.func @transform_2(%arg0: i32) -> (i32, i32) {
    %c0_i32 = arith.constant 0 : i32
    %c0_i32_0 = arith.constant 0 : i32
    %c0_i32_1 = arith.constant 0 : i32
    return %c0_i32, %c0_i32_0 : i32, i32
  }
  func.func @transform_3(%arg0: i32) -> (i32, i32) {
    %c0_i32 = arith.constant 0 : i32
    %c0_i32_0 = arith.constant 0 : i32
    %c0_i32_1 = arith.constant 0 : i32
    return %c0_i32, %c0_i32_0 : i32, i32
  }
  func.func @transform_4(%arg0: i32) -> (i32, i32) {
    %c0_i32 = arith.constant 0 : i32
    %c0_i32_0 = arith.constant 0 : i32
    %c0_i32_1 = arith.constant 0 : i32
    return %c0_i32, %c0_i32_0 : i32, i32
  }
  func.func @transform_5(%arg0: i32) -> (i32, i32) {
    %c0_i32 = arith.constant 0 : i32
    %c0_i32_0 = arith.constant 0 : i32
    %c0_i32_1 = arith.constant 0 : i32
    return %c0_i32, %c0_i32_0 : i32, i32
  }
  func.func @transform_6(%arg0: i32) -> (i32, i32) {
    %c0_i32 = arith.constant 0 : i32
    %c0_i32_0 = arith.constant 0 : i32
    %c0_i32_1 = arith.constant 0 : i32
    return %c0_i32, %c0_i32_0 : i32, i32
  }
  func.func @transform_7(%arg0: i32) -> (i32, i32) {
    %c0_i32 = arith.constant 0 : i32
    %c0_i32_0 = arith.constant 0 : i32
    %c0_i32_1 = arith.constant 0 : i32
    return %c0_i32, %c0_i32_0 : i32, i32
  }
  func.func @transform_8(%arg0: i32) -> (i32, i32) {
    %c0_i32 = arith.constant 0 : i32
    %c0_i32_0 = arith.constant 0 : i32
    %c0_i32_1 = arith.constant 0 : i32
    return %c0_i32, %c0_i32_0 : i32, i32
  }
  func.func @transform_9(%arg0: i32) -> (i32, i32) {
    %c0_i32 = arith.constant 0 : i32
    %c0_i32_0 = arith.constant 0 : i32
    return %arg0, %c0_i32 : i32, i32
  }
}

module attributes {stable_mosaic.version = 11 : i64} {
  func.func @_mlp_kernel(%arg0: i32, %arg1: memref<8x32xf32, #tpu.memory_space<vmem>>, %arg2: memref<32x128xbf16, #tpu.memory_space<vmem>>, %arg3: memref<1x128xf32, #tpu.memory_space<vmem>>, %arg4: memref<128x128xbf16, #tpu.memory_space<vmem>>, %arg5: memref<1x128xf32, #tpu.memory_space<vmem>>, %arg6: memref<128x128xbf16, #tpu.memory_space<vmem>>, %arg7: memref<1x128xf32, #tpu.memory_space<vmem>>, %arg8: memref<128x10xbf16, #tpu.memory_space<vmem>>, %arg9: memref<1x10xf32, #tpu.memory_space<vmem>>, %arg10: memref<8x10xf32, #tpu.memory_space<vmem>>) attributes {dimension_semantics = [#tpu.dimension_semantics<parallel>], iteration_bounds = array<i64: 1>, scalar_prefetch = 0 : i64, scratch_operands = 0 : i64, tpu.core_type = #tpu.core_type<tc>, window_params = [{transform_indices = @transform_0, window_bounds = array<i64: 8, 32>}, {pipeline_mode = #tpu.pipeline_mode<synchronous>, transform_indices = @transform_1, window_bounds = array<i64: 32, 128>}, {pipeline_mode = #tpu.pipeline_mode<synchronous>, transform_indices = @transform_2, window_bounds = array<i64: 1, 128>}, {pipeline_mode = #tpu.pipeline_mode<synchronous>, transform_indices = @transform_3, window_bounds = array<i64: 128, 128>}, {pipeline_mode = #tpu.pipeline_mode<synchronous>, transform_indices = @transform_4, window_bounds = array<i64: 1, 128>}, {pipeline_mode = #tpu.pipeline_mode<synchronous>, transform_indices = @transform_5, window_bounds = array<i64: 128, 128>}, {pipeline_mode = #tpu.pipeline_mode<synchronous>, transform_indices = @transform_6, window_bounds = array<i64: 1, 128>}, {pipeline_mode = #tpu.pipeline_mode<synchronous>, transform_indices = @transform_7, window_bounds = array<i64: 128, 10>}, {pipeline_mode = #tpu.pipeline_mode<synchronous>, transform_indices = @transform_8, window_bounds = array<i64: 1, 10>}, {transform_indices = @transform_9, window_bounds = array<i64: 8, 10>}]} {
    %c0 = arith.constant 0 : index
    %c0_0 = arith.constant 0 : index
    %0 = vector.load %arg1[%c0, %c0_0] : memref<8x32xf32, #tpu.memory_space<vmem>>, vector<8x32xf32>
    %1 = arith.truncf %0 : vector<8x32xf32> to vector<8x32xbf16>
    %c0_1 = arith.constant 0 : index
    %c0_2 = arith.constant 0 : index
    %2 = vector.load %arg2[%c0_1, %c0_2] : memref<32x128xbf16, #tpu.memory_space<vmem>>, vector<32x128xbf16>
    %cst = arith.constant dense<0.000000e+00> : vector<8x128xf32>
    %3 = tpu.matmul %1, %2, %cst {dimension_numbers = #tpu.dot_dimension_numbers<[1], [0], [0], [1], [0, 0, 1, 1], [], []>} : vector<8x32xbf16>, vector<32x128xbf16>, vector<8x128xf32> -> vector<8x128xf32>
    %c0_3 = arith.constant 0 : index
    %c0_4 = arith.constant 0 : index
    %4 = vector.load %arg3[%c0_3, %c0_4] : memref<1x128xf32, #tpu.memory_space<vmem>>, vector<1x128xf32>
    %5 = vector.broadcast %4 : vector<1x128xf32> to vector<8x128xf32>
    %6 = arith.addf %3, %5 : vector<8x128xf32>
    %cst_5 = arith.constant 0.000000e+00 : f32
    %7 = vector.broadcast %cst_5 : f32 to vector<8x128xf32>
    %8 = arith.maximumf %6, %7 : vector<8x128xf32>
    %9 = arith.truncf %8 : vector<8x128xf32> to vector<8x128xbf16>
    %c0_6 = arith.constant 0 : index
    %c0_7 = arith.constant 0 : index
    %10 = vector.load %arg4[%c0_6, %c0_7] : memref<128x128xbf16, #tpu.memory_space<vmem>>, vector<128x128xbf16>
    %cst_8 = arith.constant dense<0.000000e+00> : vector<8x128xf32>
    %11 = tpu.matmul %9, %10, %cst_8 {dimension_numbers = #tpu.dot_dimension_numbers<[1], [0], [0], [1], [0, 0, 1, 1], [], []>} : vector<8x128xbf16>, vector<128x128xbf16>, vector<8x128xf32> -> vector<8x128xf32>
    %c0_9 = arith.constant 0 : index
    %c0_10 = arith.constant 0 : index
    %12 = vector.load %arg5[%c0_9, %c0_10] : memref<1x128xf32, #tpu.memory_space<vmem>>, vector<1x128xf32>
    %13 = vector.broadcast %12 : vector<1x128xf32> to vector<8x128xf32>
    %14 = arith.addf %11, %13 : vector<8x128xf32>
    %cst_11 = arith.constant 0.000000e+00 : f32
    %15 = vector.broadcast %cst_11 : f32 to vector<8x128xf32>
    %16 = arith.maximumf %14, %15 : vector<8x128xf32>
    %17 = arith.truncf %16 : vector<8x128xf32> to vector<8x128xbf16>
    %c0_12 = arith.constant 0 : index
    %c0_13 = arith.constant 0 : index
    %18 = vector.load %arg6[%c0_12, %c0_13] : memref<128x128xbf16, #tpu.memory_space<vmem>>, vector<128x128xbf16>
    %cst_14 = arith.constant dense<0.000000e+00> : vector<8x128xf32>
    %19 = tpu.matmul %17, %18, %cst_14 {dimension_numbers = #tpu.dot_dimension_numbers<[1], [0], [0], [1], [0, 0, 1, 1], [], []>} : vector<8x128xbf16>, vector<128x128xbf16>, vector<8x128xf32> -> vector<8x128xf32>
    %c0_15 = arith.constant 0 : index
    %c0_16 = arith.constant 0 : index
    %20 = vector.load %arg7[%c0_15, %c0_16] : memref<1x128xf32, #tpu.memory_space<vmem>>, vector<1x128xf32>
    %21 = vector.broadcast %20 : vector<1x128xf32> to vector<8x128xf32>
    %22 = arith.addf %19, %21 : vector<8x128xf32>
    %cst_17 = arith.constant 0.000000e+00 : f32
    %23 = vector.broadcast %cst_17 : f32 to vector<8x128xf32>
    %24 = arith.maximumf %22, %23 : vector<8x128xf32>
    %25 = arith.truncf %24 : vector<8x128xf32> to vector<8x128xbf16>
    %c0_18 = arith.constant 0 : index
    %c0_19 = arith.constant 0 : index
    %26 = vector.load %arg8[%c0_18, %c0_19] : memref<128x10xbf16, #tpu.memory_space<vmem>>, vector<128x10xbf16>
    %cst_20 = arith.constant dense<0.000000e+00> : vector<8x10xf32>
    %27 = tpu.matmul %25, %26, %cst_20 {dimension_numbers = #tpu.dot_dimension_numbers<[1], [0], [0], [1], [0, 0, 1, 1], [], []>} : vector<8x128xbf16>, vector<128x10xbf16>, vector<8x10xf32> -> vector<8x10xf32>
    %c0_21 = arith.constant 0 : index
    %c0_22 = arith.constant 0 : index
    %28 = vector.load %arg9[%c0_21, %c0_22] : memref<1x10xf32, #tpu.memory_space<vmem>>, vector<1x10xf32>
    %29 = vector.broadcast %28 : vector<1x10xf32> to vector<8x10xf32>
    %30 = arith.addf %27, %29 : vector<8x10xf32>
    %c0_23 = arith.constant 0 : index
    %c0_24 = arith.constant 0 : index
    %31 = vector.load %arg10[%c0_23, %c0_24] : memref<8x10xf32, #tpu.memory_space<vmem>>, vector<8x10xf32>
    tpu.vector_store %arg10[%c0_23, %c0_24], %30 {strides = array<i32>} : memref<8x10xf32, #tpu.memory_space<vmem>>, vector<8x10xf32>,
    return
  }
  func.func @transform_0(%arg0: i32) -> (i32, i32) {
    %c0_i32 = arith.constant 0 : i32
    %c0_i32_0 = arith.constant 0 : i32
    return %arg0, %c0_i32 : i32, i32
  }
  func.func @transform_1(%arg0: i32) -> (i32, i32) {
    %c0_i32 = arith.constant 0 : i32
    %c0_i32_0 = arith.constant 0 : i32
    %c0_i32_1 = arith.constant 0 : i32
    return %c0_i32, %c0_i32_0 : i32, i32
  }
  func.func @transform_2(%arg0: i32) -> (i32, i32) {
    %c0_i32 = arith.constant 0 : i32
    %c0_i32_0 = arith.constant 0 : i32
    %c0_i32_1 = arith.constant 0 : i32
    return %c0_i32, %c0_i32_0 : i32, i32
  }
  func.func @transform_3(%arg0: i32) -> (i32, i32) {
    %c0_i32 = arith.constant 0 : i32
    %c0_i32_0 = arith.constant 0 : i32
    %c0_i32_1 = arith.constant 0 : i32
    return %c0_i32, %c0_i32_0 : i32, i32
  }
  func.func @transform_4(%arg0: i32) -> (i32, i32) {
    %c0_i32 = arith.constant 0 : i32
    %c0_i32_0 = arith.constant 0 : i32
    %c0_i32_1 = arith.constant 0 : i32
    return %c0_i32, %c0_i32_0 : i32, i32
  }
  func.func @transform_5(%arg0: i32) -> (i32, i32) {
    %c0_i32 = arith.constant 0 : i32
    %c0_i32_0 = arith.constant 0 : i32
    %c0_i32_1 = arith.constant 0 : i32
    return %c0_i32, %c0_i32_0 : i32, i32
  }
  func.func @transform_6(%arg0: i32) -> (i32, i32) {
    %c0_i32 = arith.constant 0 : i32
    %c0_i32_0 = arith.constant 0 : i32
    %c0_i32_1 = arith.constant 0 : i32
    return %c0_i32, %c0_i32_0 : i32, i32
  }
  func.func @transform_7(%arg0: i32) -> (i32, i32) {
    %c0_i32 = arith.constant 0 : i32
    %c0_i32_0 = arith.constant 0 : i32
    %c0_i32_1 = arith.constant 0 : i32
    return %c0_i32, %c0_i32_0 : i32, i32
  }
  func.func @transform_8(%arg0: i32) -> (i32, i32) {
    %c0_i32 = arith.constant 0 : i32
    %c0_i32_0 = arith.constant 0 : i32
    %c0_i32_1 = arith.constant 0 : i32
    return %c0_i32, %c0_i32_0 : i32, i32
  }
  func.func @transform_9(%arg0: i32) -> (i32, i32) {
    %c0_i32 = arith.constant 0 : i32
    %c0_i32_0 = arith.constant 0 : i32
    return %arg0, %c0_i32 : i32, i32
  }
}

</mosaic_0001>

<bundles_post_ra>
// kernel: tpu_custom_call.1
= control target key start
LH: loop header
LB: loop body
LE: loop exit
PB: predicated region body
PF: predicated region fallthrough
CT: control target
= control target key end

     0   :  { %14 = vsyncpa [#allocation3], 0  ;;  %s920_s0 = inlined_call_operand.hbm [shape: f32[8,32], index: 0, kind: input, shape index: {}]   ;;  %s921_s1 = inlined_call_operand.vmem [shape: bf16[32,128], index: 1, kind: input, shape index: {}]   ;;  %s922_s2 = inlined_call_operand.vmem [shape: f32[1,128], index: 2, kind: input, shape index: {}]   ;;  %s923_s3 = inlined_call_operand.vmem [shape: bf16[128,128], index: 3, kind: input, shape index: {}]   ;;  %s924_s4 = inlined_call_operand.vmem [shape: f32[1,128], index: 4, kind: input, shape index: {}]   ;;  %s925_s5 = inlined_call_operand.hbm [shape: bf16[128,128], index: 5, kind: input, shape index: {}]   ;;  %s926_s6 = inlined_call_operand.vmem [shape: f32[1,128], index: 6, kind: input, shape index: {}]   ;;  %s927_s7 = inlined_call_operand.vmem [shape: bf16[128,10], index: 7, kind: input, shape index: {}]   ;;  %s928_s8 = inlined_call_operand.vmem [shape: f32[1,10], index: 8, kind: input, shape index: {}]   ;;  %s929_s9 = inlined_call_operand.hbm [shape: f32[8,10], index: 9, kind: output, shape index: {}]  }
   0x1   :  { %15 = vsyncpa [#allocation6], 0 }
   0x2   :  { %16 = vsyncpa [#allocation4], 0  ;;  %s720_s30 = smov [#allocation2]   ;;  %s721_s11 = smov [#allocation5]  }
   0x3   :  { %s23_s10 = sshll.u32 %s720_s30, 4  ;;  %s40_s12 = sshll.u32 %s721_s11, 4  ;;  %s24_s10 = int_to_ptr.vmem [resolvable:$true] %s23_s10  ;;  %s777_s12 = int_to_ptr.vmem [resolvable:$true] %s40_s12 }
   0x4   :  { %s648_s15 = scalar_lea.hbm %s920_s0, 128 }
   0x5   :  { %p649_p0 = scmp.ne.s32.totalorder %s920_s0, %s648_s15  ;;  %p652_p1 = scmp.lt.u32.totalorder %s648_s15, %s920_s0 }
   0x7   :  { %p654_p2 = pnand %p652_p1, %p649_p0 }
   0x9   :  { %657 = shalt.err (!%p654_p2)
}
   0xa   :  { %s658_s20 = scalar_lea.vmem %s24_s10, 128  ;;  %p663_p4 = scmp.lt.s32.totalorder %s24_s10, %s24_s10 }
   0xb   :  { %p659_p3 = scmp.ne.s32.totalorder %s24_s10, %s658_s20  ;;  %p664_p5 = scmp.lt.s32.totalorder %s658_s20, %s658_s20 }
   0xd   :  { %p665_p6 = por %p664_p5, %p663_p4 }
   0xf   :  { %p666_p7 = pnand %p665_p6, %p659_p3 }
  0x11   :  { %669 = shalt.err (!%p666_p7)
}
  0x12   :  { %26 = dma.hbm_to_vmem [thread:$0]  %s920_s0, 128, %s24_s10, [#allocation3]  }
  0x13   :  { %s670_s25 = scalar_lea.hbm %s925_s5, 1024 }
  0x14   :  { %p671_p8 = scmp.ne.s32.totalorder %s925_s5, %s670_s25  ;;  %p674_p9 = scmp.lt.u32.totalorder %s670_s25, %s925_s5 }
  0x16   :  { %p676_p10 = pnand %p674_p9, %p671_p8 }
  0x18   :  { %679 = shalt.err (!%p676_p10)
}
  0x19   :  { %s680_s30 = scalar_lea.vmem %s777_s12, 1024  ;;  %p685_p12 = scmp.lt.s32.totalorder %s777_s12, %s777_s12 }
  0x1a   :  { %p681_p11 = scmp.ne.s32.totalorder %s777_s12, %s680_s30  ;;  %p686_p13 = scmp.lt.s32.totalorder %s680_s30, %s680_s30 }
  0x1c   :  { %p687_p0 = por %p686_p13, %p685_p12 }
  0x1e   :  { %p688_p1 = pnand %p687_p0, %p681_p11 }
  0x20   :  { %691 = shalt.err (!%p688_p1)
}
  0x21   :  { %s722_s0 = smov 64   ;;  %s723_s10 = smov 4  }
  0x22   :  { %46 = dma.hbm_to_vmem [thread:$0]  %s925_s5, 1024, %s777_s12, [#allocation6], %s722_s0, %s722_s0, %s723_s10  }
  0x23   :  { %714 = dma.done.wait [#allocation3], 128  }
  0x24   :  { %715 = vsyncadd [#allocation3], 4294967168 }
  0x25   :  { %716 = dma.done.wait [#allocation6], 1024  }
  0x26   :  { %717 = vsyncadd [#allocation6], 4294966272  ;;  %v724_v0 = vmov 0.0   ;;  %vm725_vm0 = vmmov 0   ;;  %v622_v1 = vld [vmem:[%s921_s1] sm:$0xff]   ;;  %v623_v2 = vld [vmem:[%s921_s1 + $0x8] sm:$0xff]  }
  0x27   :  { %547 = vmatprep.subr.bf16.mxu0 %v724_v0  ;;  %551 = vmatprep.mubr.msk.bf16.mxu0 %vm725_vm0, %v724_v0  ;;  %v60_v3 = vld [vmem:[#allocation2] sm:$0xff]  ;;  %v625_v6 = vld [vmem:[%s923_s3 + $0x8] sm:$0xff]   ;;  %vm85_vm1 = vcmask 261120   ;;  %v626_v7 = vld [vmem:[%s923_s3 + $0x10] sm:$0xff]   ;;  %s726_s28 = smov [#allocation7]   ;;  %vm468_vm2 = vcmask 80896  }
  0x28   :  { %555 = vmatprep.subr.bf16.mxu1 %v724_v0  ;;  %571 = vmatprep.mubr.msk.bf16.mxu1 %vm725_vm0, %v724_v0  ;;  %v624_v4 = vld [vmem:[%s923_s3] sm:$0xff]   ;;  %v61_v5 = vpack.c.bf16 %v60_v3, %v60_v3  ;;  %v627_v8 = vld [vmem:[%s923_s3 + $0x18] sm:$0xff]   ;;  %v629_v10 = vld [vmem:[%s923_s3 + $0x28] sm:$0xff]   ;;  %s476_s29 = sshll.u32 %s726_s28, 4  ;;  %s477_s29 = int_to_ptr.vmem [resolvable:$true] %s476_s29 }
  0x29   :  { %548 = vmatpush3.bf16.msra.mxu0 %v622_v1  ;;  %556 = vmatpush3.bf16.msra.mxu1 %v624_v4  ;;  %v628_v9 = vld [vmem:[%s923_s3 + $0x20] sm:$0xff]   ;;  %v630_v11 = vld [vmem:[%s923_s3 + $0x30] sm:$0xff]   ;;  %v631_v12 = vld [vmem:[%s923_s3 + $0x38] sm:$0xff]   ;;  %p697_p3 = scmp.lt.s32.totalorder %s477_s29, %s477_s29 }
  0x2a   :  { %549 = vmatprep.subr.bf16.mxu0 %v724_v0  ;;  %557 = vmatprep.subr.bf16.mxu1 %v724_v0  ;;  %v632_v13 = vld [vmem:[#allocation5] sm:$0xff]   ;;  %v633_v14 = vld [vmem:[#allocation5 + $0x8] sm:$0xff]   ;;  %v634_v15 = vld [vmem:[#allocation5 + $0x10] sm:$0xff]  }
  0x2b   :  { %v635_v16 = vld [vmem:[#allocation5 + $0x18] sm:$0xff]   ;;  %v636_v17 = vld [vmem:[#allocation5 + $0x20] sm:$0xff]   ;;  %v637_v18 = vld [vmem:[#allocation5 + $0x28] sm:$0xff]  }
  0x2c   :  { %v486_v19 = vld [vmem:[%s922_s2] ss:$0 sm:$0xff]  ;;  %v638_v27 = vld [vmem:[#allocation5 + $0x30] sm:$0xff]   ;;  %v641_v30 = vld [vmem:[%s927_s7 + $0x8] sm:$0xff]  }
  0x2d   :  { %550 = vmatpush3.bf16.msra.mxu0 %v623_v2  ;;  %558 = vmatpush3.bf16.msra.mxu1 %v625_v6  ;;  %v639_v28 = vld [vmem:[#allocation5 + $0x38] sm:$0xff]   ;;  %v642_v31 = vld [vmem:[%s927_s7 + $0x10] sm:$0xff]   ;;  %v643_v32 = vld [vmem:[%s927_s7 + $0x18] sm:$0xff]  }
  0x2e   :  { %575 = vmatprep.subr.bf16.mxu0 %v724_v0  ;;  %559 = vmatprep.subr.bf16.mxu1 %v724_v0  ;;  %v640_v29 = vld [vmem:[%s927_s7] sm:$0xff]   ;;  %v645_v34 = vld [vmem:[%s927_s7 + $0x28] sm:$0xff]   ;;  %v646_v43 = vld [vmem:[%s927_s7 + $0x30] sm:$0xff]  }
  0x2f   :  { %v644_v33 = vld [vmem:[%s927_s7 + $0x20] sm:$0xff]   ;;  %v647_v44 = vld [vmem:[%s927_s7 + $0x38] sm:$0xff]  }
  0x30   :  { %552 = vmatmul.mubr.msk.bf16.vlgmr.msra.gmra.mrb[0].mxu0 %vm85_vm1, %v61_v5  ;;  %v490_v35 = vld [vmem:[%s924_s4] ss:$0 sm:$0xff] }
  0x31   :  { %591 = vmatprep.mubr.msk.bf16.mxu0 %vm725_vm0, %v724_v0  ;;  %560 = vmatpush3.bf16.msra.mxu1 %v626_v7  ;;  %v499_v45 = vld [vmem:[%s926_s6] ss:$0 sm:$0xff]  ;;  %s692_s6 = scalar_lea.vmem %s477_s29, 128 }
  0x32   :  { %561 = vmatprep.subr.bf16.mxu1 %v724_v0  ;;  %576 = vmatpush3.bf16.msra.mxu0 %v632_v13  ;;  %v508_v53 = vld [vmem:[%s928_s8] ss:$0 sm:$0xff]  ;;  %p693_p2 = scmp.ne.s32.totalorder %s477_s29, %s692_s6  ;;  %p698_p4 = scmp.lt.s32.totalorder %s692_s6, %s692_s6 }
  0x33   :  { %577 = vmatprep.subr.bf16.mxu0 %v724_v0 }
  0x34   :  { %p699_p5 = por %p698_p4, %p697_p3 }
  0x35   :  { %562 = vmatpush3.bf16.msra.mxu1 %v627_v8 }
  0x36   :  { %563 = vmatprep.subr.bf16.mxu1 %v724_v0  ;;  %578 = vmatpush3.bf16.msra.mxu0 %v633_v14  ;;  %p700_p6 = pnand %p699_p5, %p693_p2 }
  0x37   :  { %579 = vmatprep.subr.bf16.mxu0 %v724_v0 }
  0x39   :  { %564 = vmatpush3.bf16.msra.mxu1 %v628_v9 }
  0x3a   :  { %565 = vmatprep.subr.bf16.mxu1 %v724_v0  ;;  %580 = vmatpush3.bf16.msra.mxu0 %v634_v15 }
  0x3b   :  { %581 = vmatprep.subr.bf16.mxu0 %v724_v0 }
  0x3d   :  { %566 = vmatpush3.bf16.msra.mxu1 %v629_v10 }
  0x3e   :  { %567 = vmatprep.subr.bf16.mxu1 %v724_v0  ;;  %582 = vmatpush3.bf16.msra.mxu0 %v635_v16 }
  0x3f   :  { %583 = vmatprep.subr.bf16.mxu0 %v724_v0 }
  0x41   :  { %568 = vmatpush3.bf16.msra.mxu1 %v630_v11 }
  0x42   :  { %569 = vmatprep.subr.bf16.mxu1 %v724_v0  ;;  %584 = vmatpush3.bf16.msra.mxu0 %v636_v17 }
  0x43   :  { %585 = vmatprep.subr.bf16.mxu0 %v724_v0 }
  0x45   :  { %570 = vmatpush3.bf16.msra.mxu1 %v631_v12 }
  0x46   :  { %595 = vmatprep.subr.bf16.mxu1 %v724_v0  ;;  %586 = vmatpush3.bf16.msra.mxu0 %v637_v18 }
  0x47   :  { %587 = vmatprep.subr.bf16.mxu0 %v724_v0 }
  0x4a   :  { %588 = vmatpush3.bf16.msra.mxu0 %v638_v27 }
  0x4b   :  { %589 = vmatprep.subr.bf16.mxu0 %v724_v0 }
  0x4e   :  { %590 = vmatpush3.bf16.msra.mxu0 %v639_v28 }
 0x103   :  { %v123_v20 = vpop.f32.mrb[0].mxu0 }
 0x104   :  { %v124_v21 = vadd.f32 %v486_v19, %v123_v20  ;;  %v553_v22 = vpop.f32.mrb[1].mxu0 }
 0x105   :  { %v126_v23 = vpop.f32.mrb[2].mxu0 }
 0x106   :  { %v129_v24 = vmax.f32 %v124_v21, 0.0  ;;  %v554_v25 = vpop.f32.mrb[3].mxu0 }
 0x108   :  { %v130_v26 = vpack.c.bf16 %v129_v24, %v129_v24 }
 0x10a   :  { %572 = vmatmul.mubr.bf16.vlgmr.msra.gmra.mrb[0].mxu1 %v130_v26 }
 0x10b   :  { %611 = vmatprep.mubr.msk.bf16.mxu1 %vm725_vm0, %v724_v0  ;;  %596 = vmatpush3.bf16.msra.mxu1 %v640_v29 }
 0x10c   :  { %597 = vmatprep.subr.bf16.mxu1 %v724_v0 }
 0x10f   :  { %598 = vmatpush3.bf16.msra.mxu1 %v641_v30 }
 0x110   :  { %599 = vmatprep.subr.bf16.mxu1 %v724_v0 }
 0x113   :  { %600 = vmatpush3.bf16.msra.mxu1 %v642_v31 }
 0x114   :  { %601 = vmatprep.subr.bf16.mxu1 %v724_v0 }
 0x117   :  { %602 = vmatpush3.bf16.msra.mxu1 %v643_v32 }
 0x118   :  { %603 = vmatprep.subr.bf16.mxu1 %v724_v0 }
 0x11b   :  { %604 = vmatpush3.bf16.msra.mxu1 %v644_v33 }
 0x11c   :  { %605 = vmatprep.subr.bf16.mxu1 %v724_v0 }
 0x11f   :  { %606 = vmatpush3.bf16.msra.mxu1 %v645_v34 }
 0x120   :  { %607 = vmatprep.subr.bf16.mxu1 %v724_v0 }
 0x123   :  { %608 = vmatpush3.bf16.msra.mxu1 %v646_v43 }
 0x124   :  { %609 = vmatprep.subr.bf16.mxu1 %v724_v0 }
 0x127   :  { %610 = vmatpush3.bf16.msra.mxu1 %v647_v44 }
 0x1dd   :  { %v236_v36 = vpop.f32.mrb[0].mxu1 }
 0x1de   :  { %v237_v37 = vadd.f32 %v490_v35, %v236_v36  ;;  %v573_v38 = vpop.f32.mrb[1].mxu1 }
 0x1df   :  { %v239_v39 = vpop.f32.mrb[2].mxu1 }
 0x1e0   :  { %v242_v40 = vmax.f32 %v237_v37, 0.0  ;;  %v574_v41 = vpop.f32.mrb[3].mxu1 }
 0x1e2   :  { %v243_v42 = vpack.c.bf16 %v242_v40, %v242_v40 }
 0x1e4   :  { %592 = vmatmul.mubr.bf16.vlgmr.msra.gmra.mrb[4].mxu0 %v243_v42 }
 0x2b7   :  { %v349_v46 = vpop.f32.mrb[4].mxu0 }
 0x2b8   :  { %v350_v47 = vadd.f32 %v499_v45, %v349_v46  ;;  %v593_v48 = vpop.f32.mrb[5].mxu0 }
 0x2b9   :  { %v352_v49 = vpop.f32.mrb[6].mxu0 }
 0x2ba   :  { %v355_v50 = vmax.f32 %v350_v47, 0.0  ;;  %v594_v51 = vpop.f32.mrb[7].mxu0 }
 0x2bc   :  { %v356_v52 = vpack.c.bf16 %v355_v50, %v355_v50 }
 0x2be   :  { %612 = vmatmul.mubr.bf16.vlgmr.msra.gmra.mrb[4].mxu1 %v356_v52 }
 0x391   :  { %v462_v54 = vpop.f32.mrb[4].mxu1 }
 0x392   :  { %v463_v55 = vadd.f32 %v508_v53, %v462_v54  ;;  %v613_v56 = vpop.f32.mrb[5].mxu1 }
 0x393   :  { %v465_v57 = vpop.f32.mrb[6].mxu1 }
 0x394   :  { %v614_v58 = vpop.f32.mrb[7].mxu1  ;;  %469 = vst.msk [vmem:[#allocation7] sm:$0xff] %vm468_vm2, %v463_v55 }
 0x395   :  { %703 = shalt.err (!%p700_p6)
}
 0x396   :  { %s704_s8 = scalar_lea.hbm %s929_s9, 128 }
 0x397   :  { %p705_p7 = scmp.ne.s32.totalorder %s929_s9, %s704_s8  ;;  %p708_p8 = scmp.lt.u32.totalorder %s704_s8, %s929_s9 }
 0x399   :  { %p710_p9 = pnand %p708_p8, %p705_p7 }
 0x39b   :  { %713 = shalt.err (!%p710_p9)
}
 0x39c   :  { %479 = dma.vmem_to_hbm [thread:$0]  %s477_s29, 128, %s929_s9, [#allocation4]  }
 0x39d   :  { %718 = dma.done.wait [#allocation4], 128  }
 0x39e   :  { %719 = vsyncadd [#allocation4], 4294967168 }
 0x39f   :  { %483 = vsyncpa [#allocation3], 1 }
 0x3a0   :  { %484 = vsyncpa [#allocation6], 1 }
 0x3a1   :  { %485 = vsyncpa [#allocation4], 1 }

// kernel: tpu_custom_call.1
= control target key start
LH: loop header
LB: loop body
LE: loop exit
PB: predicated region body
PF: predicated region fallthrough
CT: control target
= control target key end

     0   :  { %14 = vsyncpa [#allocation3], 0  ;;  %s920_s0 = inlined_call_operand.hbm [shape: f32[8,32], index: 0, kind: input, shape index: {}]   ;;  %s921_s1 = inlined_call_operand.vmem [shape: bf16[32,128], index: 1, kind: input, shape index: {}]   ;;  %s922_s2 = inlined_call_operand.vmem [shape: f32[1,128], index: 2, kind: input, shape index: {}]   ;;  %s923_s3 = inlined_call_operand.vmem [shape: bf16[128,128], index: 3, kind: input, shape index: {}]   ;;  %s924_s4 = inlined_call_operand.vmem [shape: f32[1,128], index: 4, kind: input, shape index: {}]   ;;  %s925_s5 = inlined_call_operand.hbm [shape: bf16[128,128], index: 5, kind: input, shape index: {}]   ;;  %s926_s6 = inlined_call_operand.vmem [shape: f32[1,128], index: 6, kind: input, shape index: {}]   ;;  %s927_s7 = inlined_call_operand.vmem [shape: bf16[128,10], index: 7, kind: input, shape index: {}]   ;;  %s928_s8 = inlined_call_operand.vmem [shape: f32[1,10], index: 8, kind: input, shape index: {}]   ;;  %s929_s9 = inlined_call_operand.hbm [shape: f32[8,10], index: 9, kind: output, shape index: {}]  }
   0x1   :  { %15 = vsyncpa [#allocation6], 0 }
   0x2   :  { %16 = vsyncpa [#allocation4], 0  ;;  %s720_s30 = smov [#allocation2]   ;;  %s721_s11 = smov [#allocation5]  }
   0x3   :  { %s23_s10 = sshll.u32 %s720_s30, 4  ;;  %s40_s12 = sshll.u32 %s721_s11, 4  ;;  %s24_s10 = int_to_ptr.vmem [resolvable:$true] %s23_s10  ;;  %s777_s12 = int_to_ptr.vmem [resolvable:$true] %s40_s12 }
   0x4   :  { %s648_s15 = scalar_lea.hbm %s920_s0, 128 }
   0x5   :  { %p649_p0 = scmp.ne.s32.totalorder %s920_s0, %s648_s15  ;;  %p652_p1 = scmp.lt.u32.totalorder %s648_s15, %s920_s0 }
   0x7   :  { %p654_p2 = pnand %p652_p1, %p649_p0 }
   0x9   :  { %657 = shalt.err (!%p654_p2)
}
   0xa   :  { %s658_s20 = scalar_lea.vmem %s24_s10, 128  ;;  %p663_p4 = scmp.lt.s32.totalorder %s24_s10, %s24_s10 }
   0xb   :  { %p659_p3 = scmp.ne.s32.totalorder %s24_s10, %s658_s20  ;;  %p664_p5 = scmp.lt.s32.totalorder %s658_s20, %s658_s20 }
   0xd   :  { %p665_p6 = por %p664_p5, %p663_p4 }
   0xf   :  { %p666_p7 = pnand %p665_p6, %p659_p3 }
  0x11   :  { %669 = shalt.err (!%p666_p7)
}
  0x12   :  { %26 = dma.hbm_to_vmem [thread:$0]  %s920_s0, 128, %s24_s10, [#allocation3]  }
  0x13   :  { %s670_s25 = scalar_lea.hbm %s925_s5, 1024 }
  0x14   :  { %p671_p8 = scmp.ne.s32.totalorder %s925_s5, %s670_s25  ;;  %p674_p9 = scmp.lt.u32.totalorder %s670_s25, %s925_s5 }
  0x16   :  { %p676_p10 = pnand %p674_p9, %p671_p8 }
  0x18   :  { %679 = shalt.err (!%p676_p10)
}
  0x19   :  { %s680_s30 = scalar_lea.vmem %s777_s12, 1024  ;;  %p685_p12 = scmp.lt.s32.totalorder %s777_s12, %s777_s12 }
  0x1a   :  { %p681_p11 = scmp.ne.s32.totalorder %s777_s12, %s680_s30  ;;  %p686_p13 = scmp.lt.s32.totalorder %s680_s30, %s680_s30 }
  0x1c   :  { %p687_p0 = por %p686_p13, %p685_p12 }
  0x1e   :  { %p688_p1 = pnand %p687_p0, %p681_p11 }
  0x20   :  { %691 = shalt.err (!%p688_p1)
}
  0x21   :  { %s722_s0 = smov 64   ;;  %s723_s10 = smov 4  }
  0x22   :  { %46 = dma.hbm_to_vmem [thread:$0]  %s925_s5, 1024, %s777_s12, [#allocation6], %s722_s0, %s722_s0, %s723_s10  }
  0x23   :  { %714 = dma.done.wait [#allocation3], 128  }
  0x24   :  { %715 = vsyncadd [#allocation3], 4294967168 }
  0x25   :  { %716 = dma.done.wait [#allocation6], 1024  }
  0x26   :  { %717 = vsyncadd [#allocation6], 4294966272  ;;  %v724_v0 = vmov 0.0   ;;  %vm725_vm0 = vmmov 0   ;;  %v622_v1 = vld [vmem:[%s921_s1] sm:$0xff]   ;;  %v623_v2 = vld [vmem:[%s921_s1 + $0x8] sm:$0xff]  }
  0x27   :  { %547 = vmatprep.subr.bf16.mxu0 %v724_v0  ;;  %551 = vmatprep.mubr.msk.bf16.mxu0 %vm725_vm0, %v724_v0  ;;  %v60_v3 = vld [vmem:[#allocation2] sm:$0xff]  ;;  %v625_v6 = vld [vmem:[%s923_s3 + $0x8] sm:$0xff]   ;;  %vm85_vm1 = vcmask 261120   ;;  %v626_v7 = vld [vmem:[%s923_s3 + $0x10] sm:$0xff]   ;;  %s726_s28 = smov [#allocation7]   ;;  %vm468_vm2 = vcmask 80896  }
  0x28   :  { %555 = vmatprep.subr.bf16.mxu1 %v724_v0  ;;  %571 = vmatprep.mubr.msk.bf16.mxu1 %vm725_vm0, %v724_v0  ;;  %v624_v4 = vld [vmem:[%s923_s3] sm:$0xff]   ;;  %v61_v5 = vpack.c.bf16 %v60_v3, %v60_v3  ;;  %v627_v8 = vld [vmem:[%s923_s3 + $0x18] sm:$0xff]   ;;  %v629_v10 = vld [vmem:[%s923_s3 + $0x28] sm:$0xff]   ;;  %s476_s29 = sshll.u32 %s726_s28, 4  ;;  %s477_s29 = int_to_ptr.vmem [resolvable:$true] %s476_s29 }
  0x29   :  { %548 = vmatpush3.bf16.msra.mxu0 %v622_v1  ;;  %556 = vmatpush3.bf16.msra.mxu1 %v624_v4  ;;  %v628_v9 = vld [vmem:[%s923_s3 + $0x20] sm:$0xff]   ;;  %v630_v11 = vld [vmem:[%s923_s3 + $0x30] sm:$0xff]   ;;  %v631_v12 = vld [vmem:[%s923_s3 + $0x38] sm:$0xff]   ;;  %p697_p3 = scmp.lt.s32.totalorder %s477_s29, %s477_s29 }
  0x2a   :  { %549 = vmatprep.subr.bf16.mxu0 %v724_v0  ;;  %557 = vmatprep.subr.bf16.mxu1 %v724_v0  ;;  %v632_v13 = vld [vmem:[#allocation5] sm:$0xff]   ;;  %v633_v14 = vld [vmem:[#allocation5 + $0x8] sm:$0xff]   ;;  %v634_v15 = vld [vmem:[#allocation5 + $0x10] sm:$0xff]  }
  0x2b   :  { %v635_v16 = vld [vmem:[#allocation5 + $0x18] sm:$0xff]   ;;  %v636_v17 = vld [vmem:[#allocation5 + $0x20] sm:$0xff]   ;;  %v637_v18 = vld [vmem:[#allocation5 + $0x28] sm:$0xff]  }
  0x2c   :  { %v486_v19 = vld [vmem:[%s922_s2] ss:$0 sm:$0xff]  ;;  %v638_v27 = vld [vmem:[#allocation5 + $0x30] sm:$0xff]   ;;  %v641_v30 = vld [vmem:[%s927_s7 + $0x8] sm:$0xff]  }
  0x2d   :  { %550 = vmatpush3.bf16.msra.mxu0 %v623_v2  ;;  %558 = vmatpush3.bf16.msra.mxu1 %v625_v6  ;;  %v639_v28 = vld [vmem:[#allocation5 + $0x38] sm:$0xff]   ;;  %v642_v31 = vld [vmem:[%s927_s7 + $0x10] sm:$0xff]   ;;  %v643_v32 = vld [vmem:[%s927_s7 + $0x18] sm:$0xff]  }
  0x2e   :  { %575 = vmatprep.subr.bf16.mxu0 %v724_v0  ;;  %559 = vmatprep.subr.bf16.mxu1 %v724_v0  ;;  %v640_v29 = vld [vmem:[%s927_s7] sm:$0xff]   ;;  %v645_v34 = vld [vmem:[%s927_s7 + $0x28] sm:$0xff]   ;;  %v646_v43 = vld [vmem:[%s927_s7 + $0x30] sm:$0xff]  }
  0x2f   :  { %v644_v33 = vld [vmem:[%s927_s7 + $0x20] sm:$0xff]   ;;  %v647_v44 = vld [vmem:[%s927_s7 + $0x38] sm:$0xff]  }
  0x30   :  { %552 = vmatmul.mubr.msk.bf16.vlgmr.msra.gmra.mrb[0].mxu0 %vm85_vm1, %v61_v5  ;;  %v490_v35 = vld [vmem:[%s924_s4] ss:$0 sm:$0xff] }
  0x31   :  { %591 = vmatprep.mubr.msk.bf16.mxu0 %vm725_vm0, %v724_v0  ;;  %560 = vmatpush3.bf16.msra.mxu1 %v626_v7  ;;  %v499_v45 = vld [vmem:[%s926_s6] ss:$0 sm:$0xff]  ;;  %s692_s6 = scalar_lea.vmem %s477_s29, 128 }
  0x32   :  { %561 = vmatprep.subr.bf16.mxu1 %v724_v0  ;;  %576 = vmatpush3.bf16.msra.mxu0 %v632_v13  ;;  %v508_v53 = vld [vmem:[%s928_s8] ss:$0 sm:$0xff]  ;;  %p693_p2 = scmp.ne.s32.totalorder %s477_s29, %s692_s6  ;;  %p698_p4 = scmp.lt.s32.totalorder %s692_s6, %s692_s6 }
  0x33   :  { %577 = vmatprep.subr.bf16.mxu0 %v724_v0 }
  0x34   :  { %p699_p5 = por %p698_p4, %p697_p3 }
  0x35   :  { %562 = vmatpush3.bf16.msra.mxu1 %v627_v8 }
  0x36   :  { %563 = vmatprep.subr.bf16.mxu1 %v724_v0  ;;  %578 = vmatpush3.bf16.msra.mxu0 %v633_v14  ;;  %p700_p6 = pnand %p699_p5, %p693_p2 }
  0x37   :  { %579 = vmatprep.subr.bf16.mxu0 %v724_v0 }
  0x39   :  { %564 = vmatpush3.bf16.msra.mxu1 %v628_v9 }
  0x3a   :  { %565 = vmatprep.subr.bf16.mxu1 %v724_v0  ;;  %580 = vmatpush3.bf16.msra.mxu0 %v634_v15 }
  0x3b   :  { %581 = vmatprep.subr.bf16.mxu0 %v724_v0 }
  0x3d   :  { %566 = vmatpush3.bf16.msra.mxu1 %v629_v10 }
  0x3e   :  { %567 = vmatprep.subr.bf16.mxu1 %v724_v0  ;;  %582 = vmatpush3.bf16.msra.mxu0 %v635_v16 }
  0x3f   :  { %583 = vmatprep.subr.bf16.mxu0 %v724_v0 }
  0x41   :  { %568 = vmatpush3.bf16.msra.mxu1 %v630_v11 }
  0x42   :  { %569 = vmatprep.subr.bf16.mxu1 %v724_v0  ;;  %584 = vmatpush3.bf16.msra.mxu0 %v636_v17 }
  0x43   :  { %585 = vmatprep.subr.bf16.mxu0 %v724_v0 }
  0x45   :  { %570 = vmatpush3.bf16.msra.mxu1 %v631_v12 }
  0x46   :  { %595 = vmatprep.subr.bf16.mxu1 %v724_v0  ;;  %586 = vmatpush3.bf16.msra.mxu0 %v637_v18 }
  0x47   :  { %587 = vmatprep.subr.bf16.mxu0 %v724_v0 }
  0x4a   :  { %588 = vmatpush3.bf16.msra.mxu0 %v638_v27 }
  0x4b   :  { %589 = vmatprep.subr.bf16.mxu0 %v724_v0 }
  0x4e   :  { %590 = vmatpush3.bf16.msra.mxu0 %v639_v28 }
 0x103   :  { %v123_v20 = vpop.f32.mrb[0].mxu0 }
 0x104   :  { %v124_v21 = vadd.f32 %v486_v19, %v123_v20  ;;  %v553_v22 = vpop.f32.mrb[1].mxu0 }
 0x105   :  { %v126_v23 = vpop.f32.mrb[2].mxu0 }
 0x106   :  { %v129_v24 = vmax.f32 %v124_v21, 0.0  ;;  %v554_v25 = vpop.f32.mrb[3].mxu0 }
 0x108   :  { %v130_v26 = vpack.c.bf16 %v129_v24, %v129_v24 }
 0x10a   :  { %572 = vmatmul.mubr.bf16.vlgmr.msra.gmra.mrb[0].mxu1 %v130_v26 }
 0x10b   :  { %611 = vmatprep.mubr.msk.bf16.mxu1 %vm725_vm0, %v724_v0  ;;  %596 = vmatpush3.bf16.msra.mxu1 %v640_v29 }
 0x10c   :  { %597 = vmatprep.subr.bf16.mxu1 %v724_v0 }
 0x10f   :  { %598 = vmatpush3.bf16.msra.mxu1 %v641_v30 }
 0x110   :  { %599 = vmatprep.subr.bf16.mxu1 %v724_v0 }
 0x113   :  { %600 = vmatpush3.bf16.msra.mxu1 %v642_v31 }
 0x114   :  { %601 = vmatprep.subr.bf16.mxu1 %v724_v0 }
 0x117   :  { %602 = vmatpush3.bf16.msra.mxu1 %v643_v32 }
 0x118   :  { %603 = vmatprep.subr.bf16.mxu1 %v724_v0 }
 0x11b   :  { %604 = vmatpush3.bf16.msra.mxu1 %v644_v33 }
 0x11c   :  { %605 = vmatprep.subr.bf16.mxu1 %v724_v0 }
 0x11f   :  { %606 = vmatpush3.bf16.msra.mxu1 %v645_v34 }
 0x120   :  { %607 = vmatprep.subr.bf16.mxu1 %v724_v0 }
 0x123   :  { %608 = vmatpush3.bf16.msra.mxu1 %v646_v43 }
 0x124   :  { %609 = vmatprep.subr.bf16.mxu1 %v724_v0 }
 0x127   :  { %610 = vmatpush3.bf16.msra.mxu1 %v647_v44 }
 0x1dd   :  { %v236_v36 = vpop.f32.mrb[0].mxu1 }
 0x1de   :  { %v237_v37 = vadd.f32 %v490_v35, %v236_v36  ;;  %v573_v38 = vpop.f32.mrb[1].mxu1 }
 0x1df   :  { %v239_v39 = vpop.f32.mrb[2].mxu1 }
 0x1e0   :  { %v242_v40 = vmax.f32 %v237_v37, 0.0  ;;  %v574_v41 = vpop.f32.mrb[3].mxu1 }
 0x1e2   :  { %v243_v42 = vpack.c.bf16 %v242_v40, %v242_v40 }
 0x1e4   :  { %592 = vmatmul.mubr.bf16.vlgmr.msra.gmra.mrb[4].mxu0 %v243_v42 }
 0x2b7   :  { %v349_v46 = vpop.f32.mrb[4].mxu0 }
 0x2b8   :  { %v350_v47 = vadd.f32 %v499_v45, %v349_v46  ;;  %v593_v48 = vpop.f32.mrb[5].mxu0 }
 0x2b9   :  { %v352_v49 = vpop.f32.mrb[6].mxu0 }
 0x2ba   :  { %v355_v50 = vmax.f32 %v350_v47, 0.0  ;;  %v594_v51 = vpop.f32.mrb[7].mxu0 }
 0x2bc   :  { %v356_v52 = vpack.c.bf16 %v355_v50, %v355_v50 }
 0x2be   :  { %612 = vmatmul.mubr.bf16.vlgmr.msra.gmra.mrb[4].mxu1 %v356_v52 }
 0x391   :  { %v462_v54 = vpop.f32.mrb[4].mxu1 }
 0x392   :  { %v463_v55 = vadd.f32 %v508_v53, %v462_v54  ;;  %v613_v56 = vpop.f32.mrb[5].mxu1 }
 0x393   :  { %v465_v57 = vpop.f32.mrb[6].mxu1 }
 0x394   :  { %v614_v58 = vpop.f32.mrb[7].mxu1  ;;  %469 = vst.msk [vmem:[#allocation7] sm:$0xff] %vm468_vm2, %v463_v55 }
 0x395   :  { %703 = shalt.err (!%p700_p6)
}
 0x396   :  { %s704_s8 = scalar_lea.hbm %s929_s9, 128 }
 0x397   :  { %p705_p7 = scmp.ne.s32.totalorder %s929_s9, %s704_s8  ;;  %p708_p8 = scmp.lt.u32.totalorder %s704_s8, %s929_s9 }
 0x399   :  { %p710_p9 = pnand %p708_p8, %p705_p7 }
 0x39b   :  { %713 = shalt.err (!%p710_p9)
}
 0x39c   :  { %479 = dma.vmem_to_hbm [thread:$0]  %s477_s29, 128, %s929_s9, [#allocation4]  }
 0x39d   :  { %718 = dma.done.wait [#allocation4], 128  }
 0x39e   :  { %719 = vsyncadd [#allocation4], 4294967168 }
 0x39f   :  { %483 = vsyncpa [#allocation3], 1 }
 0x3a0   :  { %484 = vsyncpa [#allocation6], 1 }
 0x3a1   :  { %485 = vsyncpa [#allocation4], 1 }

</bundles_post_ra>
